<compile_context>
chip_gen: v7x
topology: tpu7x:2x2x1
jax: 0.10.0
libtpu: 0.0.40
codegen_flags: <defaults>
</compile_context>

<pallas_src>
import functools
from math import exp

import numpy as np
import jax
import jax.numpy as jnp
from jax.experimental import pallas as pl
from jax.experimental.pallas import tpu as pltpu

WINDOW_SIZE = 11
SIGMA = 1.5
C1 = 0.01 ** 2
C2 = 0.03 ** 2


def _gaussian_1d(window_size: int = WINDOW_SIZE, sigma: float = SIGMA) -> np.ndarray:
    """Normalized 1D Gaussian, same as gaussian() in the reference."""
    g = np.array(
        [exp(-((x - window_size // 2) ** 2) / float(2 * sigma ** 2)) for x in range(window_size)],
        dtype=np.float64,
    )
    g = g / g.sum()
    return g.astype(np.float32)


_G1D = _gaussian_1d(WINDOW_SIZE, SIGMA)


def _band_right(n: int, g: np.ndarray) -> np.ndarray:
    """M such that (X @ M) blurs X along its last axis with zero padding."""
    K = g.shape[0]
    p = K // 2
    M = np.zeros((n, n), np.float32)
    for j in range(n):
        for t in range(K):
            m = j + t - p
            if 0 <= m < n:
                M[m, j] = g[t]
    return M


def _band_left(n: int, g: np.ndarray) -> np.ndarray:
    """M such that (M @ X) blurs X along its first axis with zero padding."""
    K = g.shape[0]
    p = K // 2
    M = np.zeros((n, n), np.float32)
    for i in range(n):
        for t in range(K):
            m = i + t - p
            if 0 <= m < n:
                M[i, m] = g[t]
    return M


def _ssim_partial_kernel(x1_ref, x2_ref, ah_ref, aw_ref, out_ref, acc_ref, *, inv_count):
    """One grid step = one (H, W) image pair.

    x1_ref, x2_ref: (1, H, W) f32 VMEM blocks (image b of the batch)
    ah_ref:         (H, H)    f32 banded Gaussian matrix (left/column blur)
    aw_ref:         (W, W)    f32 banded Gaussian matrix (right/row blur)
    out_ref:        (1, 1)    f32 final mean(ssim_map) (written at last step)
    acc_ref:        (1, 1)    f32 VMEM scratch accumulating partial sums
    """
    b = pl.program_id(0)

    @pl.when(b == 0)
    def _():
        acc_ref[...] = jnp.zeros_like(acc_ref)

    x1 = x1_ref[0]  # (H, W)
    x2 = x2_ref[0]  # (H, W)
    ah = ah_ref[...]
    aw = aw_ref[...]

    def blur(q):
        # Separable zero-padded Gaussian blur on the MXU: A_H @ (Q @ A_W).
        r = jnp.dot(q, aw, preferred_element_type=jnp.float32)
        return jnp.dot(ah, r, preferred_element_type=jnp.float32)

    mu1 = blur(x1)
    mu2 = blur(x2)
    e11 = blur(x1 * x1)
    e22 = blur(x2 * x2)
    e12 = blur(x1 * x2)

    mu1_sq = mu1 * mu1
    mu2_sq = mu2 * mu2
    mu1_mu2 = mu1 * mu2
    sigma1_sq = e11 - mu1_sq
    sigma2_sq = e22 - mu2_sq
    sigma12 = e12 - mu1_mu2

    num = (2.0 * mu1_mu2 + C1) * (2.0 * sigma12 + C2)
    den = (mu1_sq + mu2_sq + C1) * (sigma1_sq + sigma2_sq + C2)
    ssim_map = num / den

    # Partial sum over this image: lane reduce then sublane reduce.
    s = jnp.sum(ssim_map, axis=1, keepdims=True)   # (H, 1)
    s = jnp.sum(s, axis=0, keepdims=True)          # (1, 1)
    acc_ref[...] += s

    @pl.when(b == pl.num_programs(0) - 1)
    def _():
        out_ref[...] = acc_ref[...] * inv_count


def _ssim_loss_single(img1, img2):
    """1 - SSIM(img1, img2) for NCHW inputs, size_average=True."""
    N, C, H, W = img1.shape
    assert img2.shape == (N, C, H, W), "img1/img2 shape mismatch"
    B = N * C
    x1 = img1.reshape(B, H, W).astype(jnp.float32)
    x2 = img2.reshape(B, H, W).astype(jnp.float32)

    ah = jnp.asarray(_band_left(H, _G1D))   # (H, H)
    aw = jnp.asarray(_band_right(W, _G1D))  # (W, W)

    # Per-step VMEM footprint estimate: double-buffered inputs, band matrices,
    # and the f32 blur / SSIM intermediates.  Clamp to 64 MiB (v7x physical).
    est_bytes = 4 * (2 * 2 * H * W + 2 * (H * H + W * W) + 18 * H * W) + (2 << 20)
    vmem_limit = int(min(max(est_bytes, 8 << 20), 64 << 20))

    kernel = functools.partial(_ssim_partial_kernel, inv_count=1.0 / float(B * H * W))
    mean = pl.pallas_call(
        kernel,
        out_shape=jax.ShapeDtypeStruct((1, 1), jnp.float32),
        grid_spec=pltpu.PrefetchScalarGridSpec(
            num_scalar_prefetch=0,
            grid=(B,),
            in_specs=[
                pl.BlockSpec((1, H, W), lambda b: (b, 0, 0)),   # x1: one image per step
                pl.BlockSpec((1, H, W), lambda b: (b, 0, 0)),   # x2
                pl.BlockSpec((H, H), lambda b: (0, 0)),         # A_H (resident, fetched once)
                pl.BlockSpec((W, W), lambda b: (0, 0)),         # A_W (resident, fetched once)
            ],
            out_specs=pl.BlockSpec((1, 1), lambda b: (0, 0)),
            scratch_shapes=[pltpu.VMEM((1, 1), jnp.float32)],
        ),
        compiler_params=pltpu.CompilerParams(
            dimension_semantics=("arbitrary",),   # reduction over B into one scalar
            vmem_limit_bytes=vmem_limit,
        ),
    )(x1, x2, ah, aw)
    return 1.0 - mean[0, 0]


def uunet_ssim_loss(inputs, targets):
    """Forward of UUNetSSIMloss.

    inputs:  NCHW array with C == 1 (same constraint as the PyTorch module, where
             the unsqueezed target must match the input channel count), or a list
             of such arrays (multi-scale).
    targets: (N, H, W) array; cast to float32 and unsqueezed to (N, 1, H, W).
    """
    targets = targets.astype(jnp.float32)[:, None, :, :]  # (N, 1, H, W)
    if isinstance(inputs, (list, tuple)):
        loss = jnp.float32(0.0)
        for x in inputs:
            assert x.shape[1] == 1, "UUNetSSIMloss requires single-channel inputs"
            h, w = int(x.shape[2]), int(x.shape[3])
            # F.interpolate(mode='bilinear', align_corners=False) == half-pixel
            # bilinear resize; glue done in plain JAX.
            t = jax.image.resize(
                targets, (targets.shape[0], targets.shape[1], h, w), method="bilinear"
            )
            loss = loss + _ssim_loss_single(x, t)
        return loss
    assert inputs.shape[1] == 1, "UUNetSSIMloss requires single-channel inputs"
    return _ssim_loss_single(inputs, targets)


if __name__ == "__main__":
    key = jax.random.PRNGKey(0)
    k1, k2 = jax.random.split(key)
    # channel=1 so the unsqueezed target matches the input channel count,
    # exactly as the PyTorch module requires.
    inputs = jax.random.uniform(k1, (2, 1, 16, 16), dtype=jnp.float32)
    targets = jax.random.uniform(k2, (2, 16, 16), dtype=jnp.float32)

    loss = uunet_ssim_loss(inputs, targets)
    jax.block_until_ready(loss)
    print("KERNEL_OK")
</pallas_src>

<mosaic_0001>
module attributes {stable_mosaic.version = 11 : i64} {
  func.func @_ssim_partial_kernel(%arg0: i32, %arg1: memref<1x16x16xf32, #tpu.memory_space<vmem>>, %arg2: memref<1x16x16xf32, #tpu.memory_space<vmem>>, %arg3: memref<16x16xf32, #tpu.memory_space<vmem>>, %arg4: memref<16x16xf32, #tpu.memory_space<vmem>>, %arg5: memref<1x1xf32, #tpu.memory_space<vmem>>, %arg6: memref<1x1xf32, #tpu.memory_space<vmem>>) attributes {dimension_semantics = [#tpu.dimension_semantics<arbitrary>], iteration_bounds = array<i64: 2>, scalar_prefetch = 0 : i64, scratch_operands = 1 : i64, tpu.core_type = #tpu.core_type<tc>, window_params = [{transform_indices = @transform_0, window_bounds = array<i64: 1, 16, 16>}, {transform_indices = @transform_1, window_bounds = array<i64: 1, 16, 16>}, {pipeline_mode = #tpu.pipeline_mode<synchronous>, transform_indices = @transform_2, window_bounds = array<i64: 16, 16>}, {pipeline_mode = #tpu.pipeline_mode<synchronous>, transform_indices = @transform_3, window_bounds = array<i64: 16, 16>}, {pipeline_mode = #tpu.pipeline_mode<synchronous>, transform_indices = @transform_4, window_bounds = array<i64: 1, 1>}]} {
    %c0_i32 = arith.constant 0 : i32
    %0 = arith.cmpi eq, %arg0, %c0_i32 : i32
    %1 = arith.extui %0 : i1 to i32
    %c0_i32_0 = arith.constant 0 : i32
    %2 = arith.cmpi ne, %1, %c0_i32_0 : i32
    scf.if %2 {
      %cst_32 = arith.constant 0.000000e+00 : f32
      %55 = vector.broadcast %cst_32 : f32 to vector<1x1xf32>
      %c0_33 = arith.constant 0 : index
      %c0_34 = arith.constant 0 : index
      %56 = vector.load %arg6[%c0_33, %c0_34] : memref<1x1xf32, #tpu.memory_space<vmem>>, vector<1x1xf32>
      tpu.vector_store %arg6[%c0_33, %c0_34], %55 {strides = array<i32>} : memref<1x1xf32, #tpu.memory_space<vmem>>, vector<1x1xf32>,
    } else {
    }
    %c0 = arith.constant 0 : index
    %c0_1 = arith.constant 0 : index
    %c0_2 = arith.constant 0 : index
    %3 = vector.load %arg1[%c0, %c0_1, %c0_2] : memref<1x16x16xf32, #tpu.memory_space<vmem>>, vector<1x16x16xf32>
    %4 = vector.shape_cast %3 : vector<1x16x16xf32> to vector<16x16xf32>
    %c0_3 = arith.constant 0 : index
    %c0_4 = arith.constant 0 : index
    %c0_5 = arith.constant 0 : index
    %5 = vector.load %arg2[%c0_3, %c0_4, %c0_5] : memref<1x16x16xf32, #tpu.memory_space<vmem>>, vector<1x16x16xf32>
    %6 = vector.shape_cast %5 : vector<1x16x16xf32> to vector<16x16xf32>
    %c0_6 = arith.constant 0 : index
    %c0_7 = arith.constant 0 : index
    %7 = vector.load %arg3[%c0_6, %c0_7] : memref<16x16xf32, #tpu.memory_space<vmem>>, vector<16x16xf32>
    %c0_8 = arith.constant 0 : index
    %c0_9 = arith.constant 0 : index
    %8 = vector.load %arg4[%c0_8, %c0_9] : memref<16x16xf32, #tpu.memory_space<vmem>>, vector<16x16xf32>
    %cst = arith.constant dense<0.000000e+00> : vector<16x16xf32>
    %9 = tpu.matmul %4, %8, %cst {dimension_numbers = #tpu.dot_dimension_numbers<[1], [0], [0], [1], [0, 0, 1, 1], [], []>} : vector<16x16xf32>, vector<16x16xf32>, vector<16x16xf32> -> vector<16x16xf32>
    %cst_10 = arith.constant dense<0.000000e+00> : vector<16x16xf32>
    %10 = tpu.matmul %7, %9, %cst_10 {dimension_numbers = #tpu.dot_dimension_numbers<[1], [0], [0], [1], [0, 0, 1, 1], [], []>} : vector<16x16xf32>, vector<16x16xf32>, vector<16x16xf32> -> vector<16x16xf32>
    %cst_11 = arith.constant dense<0.000000e+00> : vector<16x16xf32>
    %11 = tpu.matmul %6, %8, %cst_11 {dimension_numbers = #tpu.dot_dimension_numbers<[1], [0], [0], [1], [0, 0, 1, 1], [], []>} : vector<16x16xf32>, vector<16x16xf32>, vector<16x16xf32> -> vector<16x16xf32>
    %cst_12 = arith.constant dense<0.000000e+00> : vector<16x16xf32>
    %12 = tpu.matmul %7, %11, %cst_12 {dimension_numbers = #tpu.dot_dimension_numbers<[1], [0], [0], [1], [0, 0, 1, 1], [], []>} : vector<16x16xf32>, vector<16x16xf32>, vector<16x16xf32> -> vector<16x16xf32>
    %13 = arith.mulf %4, %4 : vector<16x16xf32>
    %cst_13 = arith.constant dense<0.000000e+00> : vector<16x16xf32>
    %14 = tpu.matmul %13, %8, %cst_13 {dimension_numbers = #tpu.dot_dimension_numbers<[1], [0], [0], [1], [0, 0, 1, 1], [], []>} : vector<16x16xf32>, vector<16x16xf32>, vector<16x16xf32> -> vector<16x16xf32>
    %cst_14 = arith.constant dense<0.000000e+00> : vector<16x16xf32>
    %15 = tpu.matmul %7, %14, %cst_14 {dimension_numbers = #tpu.dot_dimension_numbers<[1], [0], [0], [1], [0, 0, 1, 1], [], []>} : vector<16x16xf32>, vector<16x16xf32>, vector<16x16xf32> -> vector<16x16xf32>
    %16 = arith.mulf %6, %6 : vector<16x16xf32>
    %cst_15 = arith.constant dense<0.000000e+00> : vector<16x16xf32>
    %17 = tpu.matmul %16, %8, %cst_15 {dimension_numbers = #tpu.dot_dimension_numbers<[1], [0], [0], [1], [0, 0, 1, 1], [], []>} : vector<16x16xf32>, vector<16x16xf32>, vector<16x16xf32> -> vector<16x16xf32>
    %cst_16 = arith.constant dense<0.000000e+00> : vector<16x16xf32>
    %18 = tpu.matmul %7, %17, %cst_16 {dimension_numbers = #tpu.dot_dimension_numbers<[1], [0], [0], [1], [0, 0, 1, 1], [], []>} : vector<16x16xf32>, vector<16x16xf32>, vector<16x16xf32> -> vector<16x16xf32>
    %19 = arith.mulf %4, %6 : vector<16x16xf32>
    %cst_17 = arith.constant dense<0.000000e+00> : vector<16x16xf32>
    %20 = tpu.matmul %19, %8, %cst_17 {dimension_numbers = #tpu.dot_dimension_numbers<[1], [0], [0], [1], [0, 0, 1, 1], [], []>} : vector<16x16xf32>, vector<16x16xf32>, vector<16x16xf32> -> vector<16x16xf32>
    %cst_18 = arith.constant dense<0.000000e+00> : vector<16x16xf32>
    %21 = tpu.matmul %7, %20, %cst_18 {dimension_numbers = #tpu.dot_dimension_numbers<[1], [0], [0], [1], [0, 0, 1, 1], [], []>} : vector<16x16xf32>, vector<16x16xf32>, vector<16x16xf32> -> vector<16x16xf32>
    %22 = arith.mulf %10, %10 : vector<16x16xf32>
    %23 = arith.mulf %12, %12 : vector<16x16xf32>
    %24 = arith.mulf %10, %12 : vector<16x16xf32>
    %25 = arith.subf %15, %22 : vector<16x16xf32>
    %26 = arith.subf %18, %23 : vector<16x16xf32>
    %27 = arith.subf %21, %24 : vector<16x16xf32>
    %cst_19 = arith.constant 2.000000e+00 : f32
    %28 = vector.broadcast %cst_19 : f32 to vector<16x16xf32>
    %29 = arith.mulf %28, %24 : vector<16x16xf32>
    %cst_20 = arith.constant 9.99999974E-5 : f32
    %30 = vector.broadcast %cst_20 : f32 to vector<16x16xf32>
    %31 = arith.addf %29, %30 : vector<16x16xf32>
    %cst_21 = arith.constant 2.000000e+00 : f32
    %32 = vector.broadcast %cst_21 : f32 to vector<16x16xf32>
    %33 = arith.mulf %32, %27 : vector<16x16xf32>
    %cst_22 = arith.constant 8.99999984E-4 : f32
    %34 = vector.broadcast %cst_22 : f32 to vector<16x16xf32>
    %35 = arith.addf %33, %34 : vector<16x16xf32>
    %36 = arith.mulf %31, %35 : vector<16x16xf32>
    %37 = arith.addf %22, %23 : vector<16x16xf32>
    %cst_23 = arith.constant 9.99999974E-5 : f32
    %38 = vector.broadcast %cst_23 : f32 to vector<16x16xf32>
    %39 = arith.addf %37, %38 : vector<16x16xf32>
    %40 = arith.addf %25, %26 : vector<16x16xf32>
    %cst_24 = arith.constant 8.99999984E-4 : f32
    %41 = vector.broadcast %cst_24 : f32 to vector<16x16xf32>
    %42 = arith.addf %40, %41 : vector<16x16xf32>
    %43 = arith.mulf %39, %42 : vector<16x16xf32>
    %44 = arith.divf %36, %43 : vector<16x16xf32>
    %cst_25 = arith.constant dense<0.000000e+00> : vector<16xf32>
    %45 = vector.multi_reduction <add>, %44, %cst_25 [1] : vector<16x16xf32> to vector<16xf32>
    %46 = vector.shape_cast %45 : vector<16xf32> to vector<16x1xf32>
    %cst_26 = arith.constant dense<0.000000e+00> : vector<1xf32>
    %47 = vector.multi_reduction <add>, %46, %cst_26 [0] : vector<16x1xf32> to vector<1xf32>
    %48 = vector.shape_cast %47 : vector<1xf32> to vector<1x1xf32>
    %c0_27 = arith.constant 0 : index
    %c0_28 = arith.constant 0 : index
    %49 = vector.load %arg6[%c0_27, %c0_28] : memref<1x1xf32, #tpu.memory_space<vmem>>, vector<1x1xf32>
    %50 = arith.addf %49, %48 : vector<1x1xf32>
    %c0_29 = arith.constant 0 : index
    %c0_30 = arith.constant 0 : index
    %51 = vector.load %arg6[%c0_29, %c0_30] : memref<1x1xf32, #tpu.memory_space<vmem>>, vector<1x1xf32>
    tpu.vector_store %arg6[%c0_29, %c0_30], %50 {strides = array<i32>} : memref<1x1xf32, #tpu.memory_space<vmem>>, vector<1x1xf32>,
    %c1_i32 = arith.constant 1 : i32
    %52 = arith.cmpi eq, %arg0, %c1_i32 : i32
    %53 = arith.extui %52 : i1 to i32
    %c0_i32_31 = arith.constant 0 : i32
    %54 = arith.cmpi ne, %53, %c0_i32_31 : i32
    scf.if %54 {
      %c0_32 = arith.constant 0 : index
      %c0_33 = arith.constant 0 : index
      %55 = vector.load %arg6[%c0_32, %c0_33] : memref<1x1xf32, #tpu.memory_space<vmem>>, vector<1x1xf32>
      %cst_34 = arith.constant 0.001953125 : f32
      %56 = vector.broadcast %cst_34 : f32 to vector<1x1xf32>
      %57 = arith.mulf %55, %56 : vector<1x1xf32>
      %c0_35 = arith.constant 0 : index
      %c0_36 = arith.constant 0 : index
      %58 = vector.load %arg5[%c0_35, %c0_36] : memref<1x1xf32, #tpu.memory_space<vmem>>, vector<1x1xf32>
      tpu.vector_store %arg5[%c0_35, %c0_36], %57 {strides = array<i32>} : memref<1x1xf32, #tpu.memory_space<vmem>>, vector<1x1xf32>,
    } else {
    }
    return
  }
  func.func @transform_0(%arg0: i32) -> (i32, i32, i32) {
    %c0_i32 = arith.constant 0 : i32
    %c0_i32_0 = arith.constant 0 : i32
    %c0_i32_1 = arith.constant 0 : i32
    return %arg0, %c0_i32, %c0_i32_0 : i32, i32, i32
  }
  func.func @transform_1(%arg0: i32) -> (i32, i32, i32) {
    %c0_i32 = arith.constant 0 : i32
    %c0_i32_0 = arith.constant 0 : i32
    %c0_i32_1 = arith.constant 0 : i32
    return %arg0, %c0_i32, %c0_i32_0 : i32, i32, i32
  }
  func.func @transform_2(%arg0: i32) -> (i32, i32) {
    %c0_i32 = arith.constant 0 : i32
    %c0_i32_0 = arith.constant 0 : i32
    %c0_i32_1 = arith.constant 0 : i32
    return %c0_i32, %c0_i32_0 : i32, i32
  }
  func.func @transform_3(%arg0: i32) -> (i32, i32) {
    %c0_i32 = arith.constant 0 : i32
    %c0_i32_0 = arith.constant 0 : i32
    %c0_i32_1 = arith.constant 0 : i32
    return %c0_i32, %c0_i32_0 : i32, i32
  }
  func.func @transform_4(%arg0: i32) -> (i32, i32) {
    %c0_i32 = arith.constant 0 : i32
    %c0_i32_0 = arith.constant 0 : i32
    %c0_i32_1 = arith.constant 0 : i32
    return %c0_i32, %c0_i32_0 : i32, i32
  }
}

</mosaic_0001>

<bundles_post_ra>
// kernel: tpu_custom_call.1
= control target key start
LH: loop header
LB: loop body
LE: loop exit
PB: predicated region body
PF: predicated region fallthrough
CT: control target
= control target key end

     0   :  { %9 = vsyncpa [#allocation4], 0  ;;  %s2021_s0 = inlined_call_operand.hbm [shape: f32[2,16,16], index: 0, kind: input, shape index: {}]   ;;  %s2022_s1 = inlined_call_operand.hbm [shape: f32[2,16,16], index: 1, kind: input, shape index: {}]   ;;  %s2023_s2 = inlined_call_operand.hbm [shape: f32[16,16], index: 2, kind: input, shape index: {}]   ;;  %s2024_s3 = inlined_call_operand.hbm [shape: f32[16,16], index: 3, kind: input, shape index: {}]   ;;  %s2025_s4 = inlined_call_operand.hbm [shape: f32[1,1], index: 4, kind: output, shape index: {}]  }
   0x1   :  { %11 = vsyncpa [#allocation4 + $0x1], 0 }
   0x2   :  { %12 = vsyncpa [#allocation7], 0 }
   0x3   :  { %14 = vsyncpa [#allocation7 + $0x1], 0 }
   0x4   :  { %15 = vsyncpa [#allocation10], 0 }
   0x5   :  { %16 = vsyncpa [#allocation5], 0  ;;  %s1739_s15 = smov 0   ;;  %s1741_s16 = smov 0  }
   0x6   :  { %s1743_s17 = smov 0   ;;  %s1745_s18 = smov 0  }
   0x7 LB: > { %s1758_s19 = sadd.s32 4294967295, %s1704_s18   ;;  %p42_p0 = scmp.ne.s32.totalorder %s1696_s16, %s1692_s15  ;;  %s1704_s18 = sphi %s1745_s18, %s2043_s18   ;;  %s1700_s17 = sphi %s1743_s17, %s2042_s17   ;;  %s1696_s16 = sphi %s1741_s16, %s2041_s16   ;;  %s1692_s15 = sphi %s1739_s15, %s2040_s15  }
   0x8   : > { %p2026_p1 = scmp.eq.s32.totalorder %s1758_s19, 0  ;;  %p1240_p2 = scmp.ge.s32.totalorder %s1704_s18, 1 }
   0x9   : > { %p142_p3 = scmp.lt.s32.totalorder %s1704_s18, 3  ;;  %s1706_s22 = smov [#allocation8]  }
   0xa   : > { %p1767_p5 = por %p2026_p1, %p42_p0  ;;  %s154_s23 = sshll.u32 %s1706_s22, 4  ;;  %s155_s23 = int_to_ptr.vmem [resolvable:$true] %s154_s23 }
   0xb   : > { %p1771_p6 = pnand %p1240_p2, %p142_p3  ;;  %s1707_s25 = smov [#allocation9]  }
   0xc   : > { %s2029_s20 = scalar_select %p1767_p5, 1, 0 }
   0xd   : > { %s2030_s21 = scalar_select %p1771_p6, 1, 0 }
   0xe   : > { %p1449_p7 = pneg %p1771_p6  ;;  %s167_s26 = sshll.u32 %s1707_s25, 4  ;;  %s1783_s26 = int_to_ptr.vmem [resolvable:$true] %s167_s26 }
   0xf   : > { %s1512_s29 = scalar_lea.hbm %s2023_s2, 256 }
  0x10   : > { %p1779_p8 = pnand %p1449_p7, %p2026_p1  ;;  %p1513_p9 = scmp.ne.s32.totalorder %s2023_s2, %s1512_s29 }
  0x11   : > { %p1519_p13 = scmp.lt.u32.totalorder %s1512_s29, %s2023_s2 }
  0x12   : > { %p1514_p10 = pneg %p1779_p8 }
  0x14   : > { %p1515_p11 = pnand %p1514_p10, %p1513_p9 }
  0x16   : > { %p1516_p12 = pneg %p1515_p11 }
  0x18   : > { %p1521_p0 = pnand %p1519_p13, %p1516_p12 }
  0x1a   : > { %1524 = shalt.err (!%p1521_p0)
}
  0x1b   : > { %s1525_s8 = scalar_lea.vmem %s155_s23, 256  ;;  %p1533_p4 = scmp.lt.s32.totalorder %s155_s23, %s155_s23 }
  0x1c   : > { %p1526_p2 = scmp.ne.s32.totalorder %s155_s23, %s1525_s8  ;;  %p1534_p1 = scmp.lt.s32.totalorder %s1525_s8, %s1525_s8 }
  0x1e   : > { %p1528_p3 = pnand %p1526_p2, %p1514_p10  ;;  %p1535_p5 = por %p1534_p1, %p1533_p4 }
  0x20   : > { %p1529_p7 = pneg %p1528_p3 }
  0x22   : > { %p1536_p6 = pnand %p1535_p5, %p1529_p7 }
  0x24   : > { %1539 = shalt.err (!%p1536_p6)
}
  0x25   : > { %s1708_s9 = smov 128   ;;  %s1709_s10 = smov 8  }
  0x26   : > { %1452 = dma.hbm_to_vmem [thread:$0]  (!%p1779_p8), %s2023_s2, 256, %s155_s23, [#allocation7], %s1708_s9, %s1708_s9, %s1709_s10  }
  0x27   : > { %s1540_s15 = scalar_lea.hbm %s2024_s3, 256 }
  0x28   : > { %p1541_p1 = scmp.ne.s32.totalorder %s2024_s3, %s1540_s15  ;;  %p1547_p6 = scmp.lt.u32.totalorder %s1540_s15, %s2024_s3 }
  0x2a   : > { %p1543_p4 = pnand %p1541_p1, %p1514_p10 }
  0x2c   : > { %p1544_p5 = pneg %p1543_p4 }
  0x2e   : > { %p1549_p9 = pnand %p1547_p6, %p1544_p5 }
  0x30   : > { %1552 = shalt.err (!%p1549_p9)
}
  0x31   : > { %s1553_s23 = scalar_lea.vmem %s1783_s26, 256  ;;  %p1561_p0 = scmp.lt.s32.totalorder %s1783_s26, %s1783_s26 }
  0x32   : > { %p1554_p11 = scmp.ne.s32.totalorder %s1783_s26, %s1553_s23  ;;  %p1562_p2 = scmp.lt.s32.totalorder %s1553_s23, %s1553_s23 }
  0x34   : > { %p1556_p12 = pnand %p1554_p11, %p1514_p10  ;;  %p1563_p3 = por %p1562_p2, %p1561_p0 }
  0x36   : > { %p1557_p13 = pneg %p1556_p12 }
  0x38   : > { %p1564_p7 = pnand %p1563_p3, %p1557_p13 }
  0x3a   : > { %1567 = shalt.err (!%p1564_p7)
}
  0x3b   : > { %1455 = dma.hbm_to_vmem [thread:$0]  (!%p1779_p8), %s2024_s3, 256, %s1783_s26, [#allocation10], %s1708_s9, %s1708_s9, %s1709_s10  }
  0x3c   : > { %s1839_s5 = sadd.s32 1, %s1704_s18   ;;  %s29_s24 = sadd.s32 1, %s1700_s17 }
  0x3d   : > { %s26_s6 = ssub.s32 %s1704_s18, %s1839_s5  ;;  %p36_p10 = scmp.ne.s32.totalorder %s1700_s17, %s1696_s16 }
  0x3e   : > { %p27_p1 = scmp.eq.s32.totalorder %s26_s6, 0  ;;  %p37_p4 = scmp.eq.s32.totalorder %s1704_s18, 0 }
  0x3f   : > { %p1465_p5 = scmp.lt.s32.totalorder %s1704_s18, 2  ;;  %s181_s7 = sand.u32 1, %s1700_s17  }
  0x40   : > { %s1850_s8 = scalar_select %p27_p1, %s1700_s17, %s29_s24  }
  0x41   : > { %p38_p6 = por %p37_p4, %p36_p10  ;;  %s1852_s11 = sshll.u32 %s181_s7, 4 }
  0x42   : > { %s1281_s12 = sshll.u32 %s1704_s18, 8  ;;  %s185_s15 = scalar_lea.vmem [#allocation3], %s1852_s11 }
  0x43   : > { %s1858_s26 = scalar_lea.hbm %s2021_s0, %s1281_s12  ;;  %s192_s22 = sshll.u32 %s185_s15, 4  ;;  %s1865_s22 = int_to_ptr.vmem [resolvable:$true] %s192_s22 }
  0x44   : > { %p1861_p8 = pnand %p1465_p5, %p38_p6  ;;  %s1870_s23 = scalar_lea.hbm %s2022_s1, %s1281_s12 }
  0x45   : > { %s1872_s29 = scalar_lea.sflag [#allocation4], %s181_s7  ;;  %s1568_s30 = scalar_lea.hbm %s1858_s26, 256 }
  0x46   : > { %p1569_p9 = scmp.ne.s32.totalorder %s1858_s26, %s1568_s30  ;;  %p1570_p11 = pneg %p1861_p8 }
  0x47   : > { %s1573_s13 = scalar_lea.hbm %s2021_s0, 512  ;;  %p1574_p0 = scmp.lt.u32.totalorder %s1858_s26, %s2021_s0 }
  0x48   : > { %p1571_p12 = pnand %p1570_p11, %p1569_p9  ;;  %p1575_p2 = scmp.lt.u32.totalorder %s1573_s13, %s1568_s30 }
  0x49   : > { %p1577_p7 = scmp.lt.u32.totalorder %s1568_s30, %s1858_s26 }
  0x4a   : > { %p1572_p13 = pneg %p1571_p12  ;;  %p1576_p3 = por %p1575_p2, %p1574_p0 }
  0x4c   : > { %p1578_p10 = por %p1577_p7, %p1576_p3 }
  0x4e   : > { %p1579_p1 = pnand %p1578_p10, %p1572_p13 }
  0x50   : > { %1582 = shalt.err (!%p1579_p1)
}
  0x51   : > { %s1583_s7 = scalar_lea.vmem %s1865_s22, 256  ;;  %s1710_s12 = smov [#allocation3]  }
  0x52   : > { %p1584_p4 = scmp.ne.s32.totalorder %s1865_s22, %s1583_s7  ;;  %s1588_s27 = sshll.u32 %s1710_s12, 4  ;;  %s1589_s27 = int_to_ptr.vmem [resolvable:$false] %s1588_s27 }
  0x53   : > { %s1590_s28 = scalar_lea.vmem %s1589_s27, 512  ;;  %p1591_p9 = scmp.lt.s32.totalorder %s1865_s22, %s1589_s27 }
  0x54   : > { %p1586_p5 = pnand %p1584_p4, %p1570_p11  ;;  %p1592_p12 = scmp.lt.s32.totalorder %s1590_s28, %s1583_s7 }
  0x56   : > { %p1587_p6 = pneg %p1586_p5  ;;  %p1593_p0 = por %p1592_p12, %p1591_p9 }
  0x58   : > { %p1594_p2 = pnand %p1593_p0, %p1587_p6 }
  0x5a   : > { %1597 = shalt.err (!%p1594_p2)
}
  0x5b   : > { %1459 = dma.hbm_to_vmem [thread:$0]  (!%p1861_p8), %s1858_s26, 256, %s1865_s22, %s1872_s29, %s1708_s9, %s1708_s9, %s1709_s10  }
  0x5c   : > { %s206_s30 = scalar_lea.vmem [#allocation6], %s1852_s11  ;;  %s202_s6 = sand.u32 1, %s1704_s18  }
  0x5d   : > { %s213_s24 = sshll.u32 %s206_s30, 4  ;;  %s1907_s13 = scalar_lea.sflag [#allocation7], %s202_s6  ;;  %s1905_s24 = int_to_ptr.vmem [resolvable:$true] %s213_s24 }
  0x5e   : > { %s1598_s14 = scalar_lea.hbm %s1870_s23, 256  ;;  %s1603_s12 = scalar_lea.hbm %s2022_s1, 512 }
  0x5f   : > { %p1599_p13 = scmp.ne.s32.totalorder %s1870_s23, %s1598_s14  ;;  %p1604_p10 = scmp.lt.u32.totalorder %s1870_s23, %s2022_s1 }
  0x60   : > { %p1605_p1 = scmp.lt.u32.totalorder %s1603_s12, %s1598_s14  ;;  %p1607_p5 = scmp.lt.u32.totalorder %s1598_s14, %s1870_s23 }
  0x61   : > { %p1601_p3 = pnand %p1599_p13, %p1570_p11 }
  0x62   : > { %p1606_p4 = por %p1605_p1, %p1604_p10 }
  0x63   : > { %p1602_p7 = pneg %p1601_p3 }
  0x64   : > { %p1608_p6 = por %p1607_p5, %p1606_p4 }
  0x66   : > { %p1609_p9 = pnand %p1608_p6, %p1602_p7 }
  0x68   : > { %1612 = shalt.err (!%p1609_p9)
}
  0x69   : > { %s1613_s18 = scalar_lea.vmem %s1905_s24, 256  ;;  %s1711_s11 = smov [#allocation6]  }
  0x6a   : > { %p1614_p12 = scmp.ne.s32.totalorder %s1905_s24, %s1613_s18  ;;  %s1618_s26 = sshll.u32 %s1711_s11, 4  ;;  %s1619_s26 = int_to_ptr.vmem [resolvable:$false] %s1618_s26 }
  0x6b   : > { %s1620_s22 = scalar_lea.vmem %s1619_s26, 512  ;;  %p1621_p13 = scmp.lt.s32.totalorder %s1905_s24, %s1619_s26 }
  0x6c   : > { %p1616_p0 = pnand %p1614_p12, %p1570_p11  ;;  %p1622_p3 = scmp.lt.s32.totalorder %s1620_s22, %s1613_s18 }
  0x6e   : > { %p1617_p2 = pneg %p1616_p0  ;;  %p1623_p10 = por %p1622_p3, %p1621_p13 }
  0x70   : > { %p1624_p1 = pnand %p1623_p10, %p1617_p2 }
  0x72   : > { %1627 = shalt.err (!%p1624_p1)
}
  0x73   : > { %1462 = dma.hbm_to_vmem [thread:$0]  (!%p1861_p8), %s1870_s23, 256, %s1905_s24, %s1907_s13, %s1708_s9, %s1708_s9, %s1709_s10  }
  0x74   : > { %p2033_p11 = scmp.ne.s32.totalorder %s2030_s21, 0 }
  0x75   : > { %s227_s29 = sand.u32 (!%p2033_p11), 1, %s1696_s16   ;;  %p2034_p7 = scmp.ne.s32.totalorder (!%p2033_p11), %s2029_s20, 0 }
  0x76   : > { %225 = sbr.rel (%p2033_p11) target bundleno = 816 (0x330), region = 36  ;;  %s1939_s30 = sshll.u32 (!%p2033_p11), %s227_s29, 4 }
  0x77   : > { %s228_s6 = scalar_lea.sflag (!%p2033_p11), [#allocation4], %s227_s29  ;;  %s231_s14 = scalar_lea.vmem (!%p2033_p11), [#allocation3], %s1939_s30 }
  0x7d   : > { %1671 = dma.done.wait (%p2034_p7), %s228_s6, 256  }
  0x7e   : > { %1673 = vsyncadd (%p2034_p7), %s228_s6, 4294967040  ;;  %s236_s9 = sand.u32 1, %s1758_s19   ;;  %s240_s21 = scalar_lea.vmem [#allocation6], %s1939_s30 }
  0x7f   : > { %s237_s10 = scalar_lea.sflag [#allocation7], %s236_s9 }
  0x80   : > { %1675 = dma.done.wait (%p2034_p7), %s237_s10, 256  }
  0x81   : > { %1677 = vsyncadd (%p2034_p7), %s237_s10, 4294967040  ;;  %p2035_p8 = scmp.eq.s32.totalorder %s1758_s19, 0 }
  0x83   : > { %1679 = dma.done.wait (%p2035_p8), [#allocation7], 256   ;;  %p2036_p4 = pmov %p2035_p8 }
  0x85   : > { %1681 = vsyncadd (%p2036_p4), [#allocation7], 4294967040  ;;  %p2037_p5 = pmov %p2036_p4 }
  0x86   : > { %p2038_p6 = pmov %p2036_p4 }
  0x87   : > { %1683 = dma.done.wait (%p2037_p5), [#allocation10], 256  }
  0x88   : > { %1685 = vsyncadd (%p2038_p6), [#allocation10], 4294967040  ;;  %p2039_p9 = scmp.ne.s32.totalorder %s1758_s19, 0 }
  0x89   : > { %vm277_vm0 = vcmask (!%p2039_p9), 0   ;;  %v1712_v0 = vmov (!%p2039_p9), 0.0  }
  0x8a   : > { %276 = sbr.rel (%p2039_p9) target bundleno = 145 (0x91), region = 56  ;;  %278 = vst.msk [vmem:[#allocation2] sm:$0x1] (!%p2039_p9), %vm277_vm0, %v1712_v0 }
  0x91 PF: > { %v285_v1 = vld [vmem:[#allocation9] sm:$0xff]  ;;  %v286_v2 = vld [vmem:[#allocation9 + $0x8] sm:$0xff]  ;;  %vm287_vm1 = vcmask 130048   ;;  %v283_v14 = vld [vmem:[#allocation8] sm:$0xff]  ;;  %vm1131_vm2 = vcmask 0   ;;  %p1276_p12 = scmp.ne.s32.totalorder %s1758_s19, 1 }
  0x92   : > { %v279_v3 = vld [vmem:[%s231_s14] sm:$0xff]  ;;  %v1393_v4 = vpack.c.bf16 %v286_v2, %v285_v1  ;;  %v280_v5 = vld [vmem:[%s231_s14 + $0x8] sm:$0xff]  ;;  %1334 = vmatprep.mubr.msk.f32.mxu1 %vm287_vm1, %v283_v14 }
  0x93   : > { %1327 = vmatprep.mubr.msk.f32.mxu0 %vm287_vm1, %v279_v3  ;;  %v281_v6 = vld [vmem:[%s240_s21] sm:$0xff]  ;;  %v606_v7 = vmul.f32 %v279_v3, %v279_v3  ;;  %v282_v8 = vld [vmem:[%s240_s21 + $0x8] sm:$0xff]  ;;  %v607_v9 = vmul.f32 %v280_v5, %v280_v5 }
  0x94   : > { %1394 = vmatprep.subr.bf16.mxu0 %v1393_v4  ;;  %v764_v10 = vmul.f32 %v281_v6, %v281_v6  ;;  %v765_v11 = vmul.f32 %v282_v8, %v282_v8  ;;  %v922_v12 = vmul.f32 %v281_v6, %v279_v3  ;;  %v923_v13 = vmul.f32 %v282_v8, %v280_v5  ;;  %v284_v20 = vld [vmem:[#allocation8 + $0x8] sm:$0xff] }
  0x95   : > { %1396 = vmatpush3.bf16.msra.mxu0 %v1393_v4 }
  0x96   : > { %1402 = vmatprep.subr.bf16.mxu0 %v1393_v4 }
  0x98   : > { %1328 = vmatmul.mubr.msk.f32.vlgmr.msra.gmra.mrb[0].mxu0 %vm287_vm1, %v280_v5 }
  0x99   : > { %1404 = vmatpush3.bf16.msra.mxu0 %v1393_v4  ;;  %1341 = vmatprep.mubr.msk.f32.mxu0 %vm287_vm1, %v281_v6 }
  0x9a   : > { %1410 = vmatprep.subr.bf16.mxu0 %v1393_v4 }
  0x9c   : > { %1342 = vmatmul.mubr.msk.f32.vlgmr.msra.gmra.mrb[2].mxu0 %vm287_vm1, %v282_v8 }
  0x9d   : > { %1412 = vmatpush3.bf16.msra.mxu0 %v1393_v4  ;;  %1355 = vmatprep.mubr.msk.f32.mxu0 %vm287_vm1, %v606_v7 }
  0x9e   : > { %1418 = vmatprep.subr.bf16.mxu0 %v1393_v4 }
  0xa0   : > { %1356 = vmatmul.mubr.msk.f32.vlgmr.msra.gmra.mrb[4].mxu0 %vm287_vm1, %v607_v9 }
  0xa1   : > { %1420 = vmatpush3.bf16.msra.mxu0 %v1393_v4  ;;  %1369 = vmatprep.mubr.msk.f32.mxu0 %vm287_vm1, %v764_v10 }
  0xa2   : > { %1426 = vmatprep.subr.bf16.mxu0 %v1393_v4 }
  0xa4   : > { %1370 = vmatmul.mubr.msk.f32.vlgmr.msra.gmra.mrb[6].mxu0 %vm287_vm1, %v765_v11 }
  0xa5   : > { %1428 = vmatpush3.bf16.msra.mxu0 %v1393_v4  ;;  %1383 = vmatprep.mubr.msk.f32.mxu0 %vm287_vm1, %v922_v12 }
  0xa8   : > { %1384 = vmatmul.mubr.msk.f32.vlgmr.msra.gmra.mrb[8].mxu0 %vm287_vm1, %v923_v13 }
 0x16b   : > { %v1329_v15 = vpop.f32.mrb[0].mxu0 }
 0x16c   : > { %v360_v16 = vpop.f32.mrb[1].mxu0 }
 0x16d   : > { %v1397_v17 = vpack.c.bf16 %v1329_v15, %v360_v16 }
 0x16f   : > { %1398 = vmatprep.subr.bf16.mxu1 %v1397_v17  ;;  %v1343_v18 = vpop.f32.mrb[2].mxu0 }
 0x170   : > { %1400 = vmatpush3.bf16.msra.mxu1 %v1397_v17  ;;  %v522_v19 = vpop.f32.mrb[3].mxu0 }
 0x171   : > { %v1405_v21 = vpack.c.bf16 %v1343_v18, %v522_v19 }
 0x173   : > { %1335 = vmatmul.mubr.msk.f32.vlgmr.msra.gmra.mrb[0].mxu1 %vm287_vm1, %v284_v20  ;;  %1406 = vmatprep.subr.bf16.mxu1 %v1405_v21  ;;  %v1357_v22 = vpop.f32.mrb[4].mxu0 }
 0x174   : > { %1408 = vmatpush3.bf16.msra.mxu1 %v1405_v21  ;;  %v680_v23 = vpop.f32.mrb[5].mxu0  ;;  %1348 = vmatprep.mubr.msk.f32.mxu1 %vm287_vm1, %v283_v14 }
 0x175   : > { %v1413_v24 = vpack.c.bf16 %v1357_v22, %v680_v23  ;;  %v1129_v23 = vld [vmem:[#allocation2] sm:$0x1] }
 0x177   : > { %1349 = vmatmul.mubr.msk.f32.vlgmr.msra.gmra.mrb[2].mxu1 %vm287_vm1, %v284_v20  ;;  %1414 = vmatprep.subr.bf16.mxu1 %v1413_v24  ;;  %v1371_v25 = vpop.f32.mrb[6].mxu0 }
 0x178   : > { %1416 = vmatpush3.bf16.msra.mxu1 %v1413_v24  ;;  %v838_v26 = vpop.f32.mrb[7].mxu0  ;;  %1362 = vmatprep.mubr.msk.f32.mxu1 %vm287_vm1, %v283_v14 }
 0x179   : > { %v1421_v27 = vpack.c.bf16 %v1371_v25, %v838_v26 }
 0x17b   : > { %1363 = vmatmul.mubr.msk.f32.vlgmr.msra.gmra.mrb[4].mxu1 %vm287_vm1, %v284_v20  ;;  %1422 = vmatprep.subr.bf16.mxu1 %v1421_v27  ;;  %v1385_v28 = vpop.f32.mrb[8].mxu0 }
 0x17c   : > { %1424 = vmatpush3.bf16.msra.mxu1 %v1421_v27  ;;  %v996_v29 = vpop.f32.mrb[9].mxu0  ;;  %1376 = vmatprep.mubr.msk.f32.mxu1 %vm287_vm1, %v283_v14 }
 0x17d   : > { %v1429_v30 = vpack.c.bf16 %v1385_v28, %v996_v29 }
 0x17f   : > { %1377 = vmatmul.mubr.msk.f32.vlgmr.msra.gmra.mrb[6].mxu1 %vm287_vm1, %v284_v20  ;;  %1430 = vmatprep.subr.bf16.mxu1 %v1429_v30 }
 0x180   : > { %1432 = vmatpush3.bf16.msra.mxu1 %v1429_v30  ;;  %1390 = vmatprep.mubr.msk.f32.mxu1 %vm287_vm1, %v283_v14 }
 0x183   : > { %1391 = vmatmul.mubr.msk.f32.vlgmr.msra.gmra.mrb[8].mxu1 %vm287_vm1, %v284_v20 }
 0x246   : > { %v1336_v31 = vpop.f32.mrb[0].mxu1 }
 0x247   : > { %v441_v32 = vpop.f32.mrb[1].mxu1  ;;  %v1081_v34 = vmul.f32 %v1336_v31, %v1336_v31 }
 0x248   : > { %v1080_v38 = vmul.f32 %v441_v32, %v441_v32 }
 0x24a   : > { %v1350_v33 = vpop.f32.mrb[2].mxu1 }
 0x24b   : > { %v1083_v35 = vmul.f32 %v1350_v33, %v1350_v33  ;;  %v1085_v36 = vmul.f32 %v1350_v33, %v1336_v31  ;;  %v597_v37 = vpop.f32.mrb[3].mxu1 }
 0x24c   : > { %v1082_v39 = vmul.f32 %v597_v37, %v597_v37  ;;  %v1084_v40 = vmul.f32 %v597_v37, %v441_v32 }
 0x24d   : > { %v1103_v41 = vadd.f32 %v1083_v35, %v1081_v34  ;;  %v1093_v54 = vmul.f32 2.0, %v1085_v36 }
 0x24e   : > { %v1102_v42 = vadd.f32 %v1082_v39, %v1080_v38  ;;  %v1364_v43 = vpop.f32.mrb[4].mxu1  ;;  %v1092_v59 = vmul.f32 2.0, %v1084_v40 }
 0x24f   : > { %v1087_v44 = vsub.f32 %v1364_v43, %v1081_v34  ;;  %v755_v45 = vpop.f32.mrb[5].mxu1  ;;  %v1105_v55 = vadd.f32 0.0001, %v1103_v41  ;;  %v1095_v3 = vadd.f32 0.0001, %v1093_v54 }
 0x250   : > { %v1086_v46 = vsub.f32 %v755_v45, %v1080_v38  ;;  %v1104_v60 = vadd.f32 0.0001, %v1102_v42  ;;  %v1094_v5 = vadd.f32 0.0001, %v1092_v59 }
 0x252   : > { %v1378_v47 = vpop.f32.mrb[6].mxu1 }
 0x253   : > { %v1089_v48 = vsub.f32 %v1378_v47, %v1083_v35  ;;  %v913_v49 = vpop.f32.mrb[7].mxu1 }
 0x254   : > { %v1088_v50 = vsub.f32 %v913_v49, %v1082_v39 }
 0x255   : > { %v1107_v51 = vadd.f32 %v1089_v48, %v1087_v44 }
 0x256   : > { %v1106_v52 = vadd.f32 %v1088_v50, %v1086_v46  ;;  %v1392_v53 = vpop.f32.mrb[8].mxu1 }
 0x257   : > { %v1109_v56 = vadd.f32 0.0009, %v1107_v51  ;;  %v1091_v57 = vsub.f32 %v1392_v53, %v1085_v36  ;;  %v1071_v58 = vpop.f32.mrb[9].mxu1 }
 0x258   : > { %v1108_v61 = vadd.f32 0.0009, %v1106_v52  ;;  %v1090_v62 = vsub.f32 %v1071_v58, %v1084_v40 }
 0x259   : > { %v1111_v63 = vmul.f32 %v1109_v56, %v1105_v55  ;;  %v1097_v0 = vmul.f32 2.0, %v1091_v57 }
 0x25a   : > { %v1110_v1 = vmul.f32 %v1108_v61, %v1104_v60  ;;  %v1096_v2 = vmul.f32 2.0, %v1090_v62 }
 0x25b   : > { %1508 = vrcp.f32 %v1111_v63  ;;  %v1099_v4 = vadd.f32 0.0009, %v1097_v0 }
 0x25c   : > { %1510 = vrcp.f32 %v1110_v1  ;;  %v1098_v6 = vadd.f32 0.0009, %v1096_v2 }
 0x25d   : > { %v1101_v7 = vmul.f32 %v1099_v4, %v1095_v3 }
 0x25e   : > { %v1100_v8 = vmul.f32 %v1098_v6, %v1094_v5 }
 0x265   : > { %v1509_v9 = vpop.eup %1508 }
 0x266   : > { %v1511_v10 = vpop.eup %1510  ;;  %v1115_v11 = vmul.f32 %v1509_v9, %v1101_v7 }
 0x267   : > { %v1113_v12 = vmul.f32 %v1511_v10, %v1100_v8 }
 0x268   : > { %v1119_v14 = vsel %vm287_vm1, %v1115_v11, 0.0 }
 0x269   : > { %v1116_v13 = vsel %vm287_vm1, %v1113_v12, 0.0 }
 0x26a   : > { %1117 = vadd.xlane.f32.xlu0 %v1116_v13 }
 0x26e   : > { %1120 = vadd.xlane.f32.xlu0 %v1119_v14 }
 0x2f7   : > { %v1118_v15 = vpop.xlane.xlu0 %1117 }
 0x2fb   : > { %v1121_v16 = vpop.xlane.xlu0 %1120 }
 0x2fc   : > { %v1122_v17 = vadd.f32 %v1121_v16, %v1118_v15 }
 0x2fe   : > { %v1123_v18 = vrot.slane %v1122_v17, 4 }
 0x300   : > { %v1124_v19 = vadd.f32 %v1123_v18, %v1122_v17 }
 0x302   : > { %v1125_v20 = vrot.slane %v1124_v19, 2 }
 0x304   : > { %v1126_v21 = vadd.f32 %v1125_v20, %v1124_v19 }
 0x306   : > { %v1127_v22 = vrot.slane %v1126_v21, 1  ;;  %1136 = sbr.rel (%p1276_p12) target bundleno = 791 (0x317), region = 60 }
 0x308   : > { %v1128_v24 = vadd.f32 %v1127_v22, %v1126_v21 }
 0x30a   : > { %v1130_v25 = vadd.f32 %v1129_v23, %v1128_v24 }
 0x30c   : > { %1132 = vst.msk [vmem:[#allocation2] sm:$0x1] %vm1131_vm2, %v1130_v25 }
 0x313   : > { %v1137_v26 = vld [vmem:[#allocation2] sm:$0x1] }
 0x314   : > { %v1138_v27 = vmul.f32 0.001953125, %v1137_v26 }
 0x316   : > { %1139 = vst.msk [vmem:[#allocation11] sm:$0x1] %vm1131_vm2, %v1138_v27 }
 0x317 PF: > { %p1468_p0 = scmp.eq.s32.totalorder %s1758_s19, 1  ;;  %s1713_s20 = smov [#allocation11]  }
 0x318   : > { %s1147_s25 = sshll.u32 %s1713_s20, 4  ;;  %s1148_s25 = int_to_ptr.vmem [resolvable:$true] %s1147_s25 }
 0x319   : > { %s1628_s23 = scalar_lea.vmem %s1148_s25, 16  ;;  %s1634_s24 = scalar_lea.vmem %s1148_s25, 32 }
 0x31a   : > { %p1629_p2 = scmp.ne.s32.totalorder %s1148_s25, %s1628_s23  ;;  %p1635_p10 = scmp.lt.s32.totalorder %s1148_s25, %s1148_s25 }
 0x31b   : > { %p1636_p1 = scmp.lt.s32.totalorder %s1634_s24, %s1628_s23 }
 0x31c   : > { %p1630_p13 = pnand %p1629_p2, %p1468_p0 }
 0x31d   : > { %p1637_p11 = por %p1636_p1, %p1635_p10 }
 0x31e   : > { %p1631_p3 = pneg %p1630_p13 }
 0x320   : > { %p1638_p7 = pnand %p1637_p11, %p1631_p3 }
 0x322   : > { %1641 = shalt.err (!%p1638_p7)
}
 0x323   : > { %s1642_s7 = scalar_lea.hbm %s2025_s4, 16 }
 0x324   : > { %p1643_p8 = scmp.ne.s32.totalorder %s2025_s4, %s1642_s7  ;;  %p1648_p6 = scmp.lt.u32.totalorder %s1642_s7, %s2025_s4 }
 0x326   : > { %p1644_p4 = pnand %p1643_p8, %p1468_p0 }
 0x328   : > { %p1645_p5 = pneg %p1644_p4 }
 0x32a   : > { %p1650_p9 = pnand %p1648_p6, %p1645_p5 }
 0x32c   : > { %1653 = shalt.err (!%p1650_p9)
}
 0x32d   : > { %1446 = dma.vmem_to_hbm [thread:$0]  (%p1468_p0), %s1148_s25, 16, %s2025_s4, [#allocation5]  }
 0x32e   : > { %1687 = dma.done.wait (%p1468_p0), [#allocation5], 16  }
 0x32f   : > { %1689 = vsyncadd (%p1468_p0), [#allocation5], 4294967280 }
 0x330 PF: > { %p19_p12 = scmp.ge.s32.totalorder %s1839_s5, 4   ;;  %s2040_s15 = smov %s1696_s16 }
 0x331   : > { %s2041_s16 = smov %s1700_s17  ;;  %s2042_s17 = smov %s1850_s8 }
 0x332   : > { %s2043_s18 = smov %s1839_s5  ;;  %21 = sbr.rel (!%p19_p12) target bundleno = 7 (0x7), region = 102 }
 0x339   :  { %1160 = vsyncpa [#allocation4], 1 }
 0x33a   :  { %1162 = vsyncpa [#allocation4 + $0x1], 1 }
 0x33b   :  { %1163 = vsyncpa [#allocation7], 1 }
 0x33c   :  { %1165 = vsyncpa [#allocation7 + $0x1], 1 }
 0x33d   :  { %1166 = vsyncpa [#allocation10], 1 }
 0x33e   :  { %1167 = vsyncpa [#allocation5], 1 }
 0x33f   :  { %1169 = vsyncpa [#allocation5 + $0x1], 1 }

</bundles_post_ra>
